<compile_context>
chip_gen: v7x
topology: tpu7x:2x2x1
jax: 0.10.0
libtpu: 0.0.40
codegen_flags: <defaults>
</compile_context>

<pallas_src>
import functools
import re

import jax
import jax.numpy as jnp
from jax.experimental import pallas as pl
from jax.experimental.pallas import tpu as pltpu


def _conv1x1_kernel(x_ref, w_ref, b_ref, o_ref, *, bt, c_in, use_mxu):
    # x_ref: (Bt, C_in, tn)   channels on sublanes, pixels on lanes
    # w_ref: (C_out, C_in)    full 1x1-conv weight (grid-invariant)
    # b_ref: (C_out, 1)       bias (broadcast along lanes)
    # o_ref: (Bt, C_out, tn)  lane-dense output tile
    w = w_ref[...].astype(jnp.float32)
    b = b_ref[...].astype(jnp.float32)
    for bi in range(bt):  # static unroll over the batch block (Bt is small)
        x = x_ref[bi].astype(jnp.float32)                 # (C_in, tn)
        if use_mxu:
            # MXU matmul, f32 accumulate; HIGHEST keeps f32 accuracy (kernel is
            # memory-bound, the extra MXU passes are free).
            acc = jnp.dot(w, x, preferred_element_type=jnp.float32,
                          precision=jax.lax.Precision.HIGHEST) + b
        else:
            # Small K on v5e/unknown: VPU broadcast-FMAs; bias folded into the
            # first multiply-add (saves one full (C_out, tn) add pass per tile).
            acc = w[:, 0:1] * x[0:1, :] + b
            for c in range(1, c_in):                      # static unroll
                acc = acc + w[:, c:c + 1] * x[c:c + 1, :]
        o_ref[bi] = acc.astype(o_ref.dtype)


def _tpu_generation():
    """Best-effort TPU generation (5, 6, 7, ...) from the device kind string."""
    try:
        kind = jax.devices()[0].device_kind
    except Exception:
        return None
    m = re.search(r"(\d+)", kind)
    return int(m.group(1)) if m else None


def _select_tiles(B, HW, bytes_per_px, gen):
    """Pick (tn, bt) so each grid step moves enough HBM bytes while staying inside a
    conservative per-generation double-buffered VMEM budget."""
    if gen is not None and gen >= 7:
        # v7x: 3.2 TB/s HBM -> need ~2.3x bigger steps; 64 MiB physical VMEM.
        max_tile, target_step_bytes, vmem_budget = 16384, 6 << 20, 24 << 20
    elif gen == 6:
        max_tile, target_step_bytes, vmem_budget = 8192, 3 << 20, 28 << 20
    else:  # v5e / unknown: 16 MiB scoped-VMEM default -> stay well inside it.
        max_tile, target_step_bytes, vmem_budget = 8192, 2 << 20, 12 << 20

    # Pixel tile: full H*W if it fits (always a legal block); otherwise balance the
    # steps (divisor-friendly, avoids an underfilled ragged tail) and round to lanes.
    if HW <= max_tile:
        tn = HW
    else:
        n_steps = -(-HW // max_tile)
        tn = -(-HW // n_steps)
        tn = ((tn + 127) // 128) * 128

    def footprint(bt_):  # double-buffered input + output tiles
        return 2 * bt_ * tn * bytes_per_px

    # Shrink tn if even bt=1 would blow the budget (anchor-dense heads / huge C_out).
    while tn > 128 and footprint(1) > vmem_budget:
        tn = max(128, ((tn // 2) // 128) * 128)

    # Batch block: hit the per-step byte target, capped by VMEM budget, unroll size
    # and batch; on v7x keep >= 2 batch blocks so both TensorCores get work.
    row_bytes = max(tn * bytes_per_px, 1)
    bt = max(1, min(B, 64, target_step_bytes // row_bytes))
    while bt > 1 and footprint(bt) > vmem_budget:
        bt -= 1
    if gen is not None and gen >= 7 and B >= 2:
        bt = min(bt, -(-B // 2))
    while B % bt != 0:   # keep batch blocks uniform (no ragged leading-dim blocks)
        bt -= 1
    return tn, bt


def conv_detector_forward(x, weight, bias, num_classes, num_anchors):
    """x: (B, C_in, H, W), weight: (C_out, C_in, 1, 1), bias: (C_out,)."""
    B, C_in, H, W = x.shape
    C_out = weight.shape[0]
    assert weight.shape[1] == C_in
    assert weight.shape[2:] == (1, 1), "ConvDetector uses a 1x1 conv kernel"
    assert C_out == (5 + num_classes) * num_anchors
    HW = H * W

    gen = _tpu_generation()
    out_dtype = x.dtype
    bytes_per_px = (C_in * jnp.dtype(x.dtype).itemsize
                    + C_out * jnp.dtype(out_dtype).itemsize)
    tn, bt = _select_tiles(B, HW, bytes_per_px, gen)
    grid = (B // bt, pl.cdiv(HW, tn))

    x3 = x.reshape(B, C_in, HW)                 # free reshape (NCHW contiguous)
    w_mat = weight.reshape(C_out, C_in)
    b_mat = bias.reshape(C_out, 1)

    # MXU even at tiny K on v6e/v7x (vector-extended slot is otherwise idle and the
    # VPU FMA path can become the binding slot there); VPU path on v5e / unknown.
    use_mxu = (C_in >= 32) or (gen is not None and gen >= 6)

    kernel = functools.partial(_conv1x1_kernel, bt=bt, c_in=C_in, use_mxu=use_mxu)

    # Raise the scoped VMEM limit only if the chosen tiles actually need it.
    step_vmem = 2 * bt * tn * bytes_per_px + 2 * C_out * (C_in + 1) * 4
    scoped_default = (16 << 20) if (gen is None or gen <= 5) else (32 << 20)
    cp_kwargs = dict(dimension_semantics=("parallel", "parallel"))
    if step_vmem + (2 << 20) > scoped_default:
        cp_kwargs["vmem_limit_bytes"] = int(step_vmem + (4 << 20))

    out = pl.pallas_call(
        kernel,
        out_shape=jax.ShapeDtypeStruct((B, C_out, HW), out_dtype),
        grid_spec=pltpu.PrefetchScalarGridSpec(
            num_scalar_prefetch=0,
            grid=grid,
            in_specs=[
                pl.BlockSpec((bt, C_in, tn), lambda bb, j: (bb, 0, j)),
                # Grid-invariant constants: constant index_map -> no re-DMA per step.
                pl.BlockSpec((C_out, C_in), lambda bb, j: (0, 0)),
                pl.BlockSpec((C_out, 1), lambda bb, j: (0, 0)),
            ],
            out_specs=pl.BlockSpec((bt, C_out, tn), lambda bb, j: (bb, 0, j)),
        ),
        compiler_params=pltpu.CompilerParams(**cp_kwargs),
    )(x3, w_mat, b_mat)

    # TODO(synk): optionally emit bf16 output (~40% less HBM traffic on this
    # write-dominated head) if downstream post-processing tolerates it; kept f32
    # here to match the PyTorch reference exactly.
    # (B, C_out, HW) -> (B, 5+nc, na, H, W): contiguous reshape, identical to .view().
    return out.reshape(B, 5 + num_classes, num_anchors, H, W)


if __name__ == "__main__":
    # Small deterministic config consistent with the module.
    B, in_channels, H, W = 2, 4, 16, 16
    num_classes, num_anchors = 3, 2
    C_out = (5 + num_classes) * num_anchors  # 16

    key = jax.random.PRNGKey(0)
    kx, kw, kb = jax.random.split(key, 3)
    x = jax.random.normal(kx, (B, in_channels, H, W), dtype=jnp.float32)
    # Deterministic synthetic params (shapes match nn.Conv2d(in, out, 1)).
    weight = jax.random.normal(kw, (C_out, in_channels, 1, 1), dtype=jnp.float32) * 0.1
    bias = jax.random.normal(kb, (C_out,), dtype=jnp.float32) * 0.1

    out = conv_detector_forward(x, weight, bias, num_classes, num_anchors)
    out = jax.block_until_ready(out)

    # Pure-JAX reference (same math, no Pallas), f32 precision.
    ref = jnp.einsum("bchw,oc->bohw", x, weight.reshape(C_out, in_channels),
                     precision=jax.lax.Precision.HIGHEST) \
          + bias.reshape(1, C_out, 1, 1)
    ref = ref.reshape(B, 5 + num_classes, num_anchors, H, W)

    assert out.shape == (B, 5 + num_classes, num_anchors, H, W)
    assert jnp.allclose(out, ref, atol=1e-4, rtol=1e-4), \
        float(jnp.max(jnp.abs(out - ref)))
    print("KERNEL_OK")
</pallas_src>

<mosaic_0001>
module attributes {stable_mosaic.version = 11 : i64} {
  func.func @_conv1x1_kernel(%arg0: i32, %arg1: i32, %arg2: memref<2x4x256xf32, #tpu.memory_space<vmem>>, %arg3: memref<16x4xf32, #tpu.memory_space<vmem>>, %arg4: memref<16x1xf32, #tpu.memory_space<vmem>>, %arg5: memref<2x16x256xf32, #tpu.memory_space<vmem>>) attributes {dimension_semantics = [#tpu.dimension_semantics<parallel>, #tpu.dimension_semantics<parallel>], iteration_bounds = array<i64: 1, 1>, scalar_prefetch = 0 : i64, scratch_operands = 0 : i64, tpu.core_type = #tpu.core_type<tc>, window_params = [{transform_indices = @transform_0, window_bounds = array<i64: 2, 4, 256>}, {pipeline_mode = #tpu.pipeline_mode<synchronous>, transform_indices = @transform_1, window_bounds = array<i64: 16, 4>}, {pipeline_mode = #tpu.pipeline_mode<synchronous>, transform_indices = @transform_2, window_bounds = array<i64: 16, 1>}, {transform_indices = @transform_3, window_bounds = array<i64: 2, 16, 256>}]} {
    %c0 = arith.constant 0 : index
    %c0_0 = arith.constant 0 : index
    %0 = vector.load %arg3[%c0, %c0_0] : memref<16x4xf32, #tpu.memory_space<vmem>>, vector<16x4xf32>
    %c0_1 = arith.constant 0 : index
    %c0_2 = arith.constant 0 : index
    %1 = vector.load %arg4[%c0_1, %c0_2] : memref<16x1xf32, #tpu.memory_space<vmem>>, vector<16x1xf32>
    %c0_3 = arith.constant 0 : index
    %c0_4 = arith.constant 0 : index
    %c0_5 = arith.constant 0 : index
    %2 = vector.load %arg2[%c0_3, %c0_4, %c0_5] : memref<2x4x256xf32, #tpu.memory_space<vmem>>, vector<1x4x256xf32>
    %3 = vector.shape_cast %2 : vector<1x4x256xf32> to vector<4x256xf32>
    %4 = vector.extract_strided_slice %0 {offsets = [0, 0], sizes = [16, 1], strides = [1, 1]} : vector<16x4xf32> to vector<16x1xf32>
    %5 = vector.extract_strided_slice %3 {offsets = [0, 0], sizes = [1, 256], strides = [1, 1]} : vector<4x256xf32> to vector<1x256xf32>
    %6 = vector.broadcast %4 : vector<16x1xf32> to vector<16x256xf32>
    %7 = vector.broadcast %5 : vector<1x256xf32> to vector<16x256xf32>
    %8 = arith.mulf %6, %7 : vector<16x256xf32>
    %9 = vector.broadcast %1 : vector<16x1xf32> to vector<16x256xf32>
    %10 = arith.addf %8, %9 : vector<16x256xf32>
    %11 = vector.extract_strided_slice %0 {offsets = [0, 1], sizes = [16, 1], strides = [1, 1]} : vector<16x4xf32> to vector<16x1xf32>
    %12 = vector.extract_strided_slice %3 {offsets = [1, 0], sizes = [1, 256], strides = [1, 1]} : vector<4x256xf32> to vector<1x256xf32>
    %13 = vector.broadcast %11 : vector<16x1xf32> to vector<16x256xf32>
    %14 = vector.broadcast %12 : vector<1x256xf32> to vector<16x256xf32>
    %15 = arith.mulf %13, %14 : vector<16x256xf32>
    %16 = arith.addf %10, %15 : vector<16x256xf32>
    %17 = vector.extract_strided_slice %0 {offsets = [0, 2], sizes = [16, 1], strides = [1, 1]} : vector<16x4xf32> to vector<16x1xf32>
    %18 = vector.extract_strided_slice %3 {offsets = [2, 0], sizes = [1, 256], strides = [1, 1]} : vector<4x256xf32> to vector<1x256xf32>
    %19 = vector.broadcast %17 : vector<16x1xf32> to vector<16x256xf32>
    %20 = vector.broadcast %18 : vector<1x256xf32> to vector<16x256xf32>
    %21 = arith.mulf %19, %20 : vector<16x256xf32>
    %22 = arith.addf %16, %21 : vector<16x256xf32>
    %23 = vector.extract_strided_slice %0 {offsets = [0, 3], sizes = [16, 1], strides = [1, 1]} : vector<16x4xf32> to vector<16x1xf32>
    %24 = vector.extract_strided_slice %3 {offsets = [3, 0], sizes = [1, 256], strides = [1, 1]} : vector<4x256xf32> to vector<1x256xf32>
    %25 = vector.broadcast %23 : vector<16x1xf32> to vector<16x256xf32>
    %26 = vector.broadcast %24 : vector<1x256xf32> to vector<16x256xf32>
    %27 = arith.mulf %25, %26 : vector<16x256xf32>
    %28 = arith.addf %22, %27 : vector<16x256xf32>
    %c0_6 = arith.constant 0 : index
    %c0_7 = arith.constant 0 : index
    %c0_8 = arith.constant 0 : index
    %29 = vector.load %arg5[%c0_6, %c0_7, %c0_8] : memref<2x16x256xf32, #tpu.memory_space<vmem>>, vector<1x16x256xf32>
    %30 = vector.shape_cast %29 : vector<1x16x256xf32> to vector<16x256xf32>
    %31 = vector.shape_cast %28 : vector<16x256xf32> to vector<1x16x256xf32>
    tpu.vector_store %arg5[%c0_6, %c0_7, %c0_8], %31 {strides = array<i32>} : memref<2x16x256xf32, #tpu.memory_space<vmem>>, vector<1x16x256xf32>,
    %c1 = arith.constant 1 : index
    %c0_9 = arith.constant 0 : index
    %c0_10 = arith.constant 0 : index
    %32 = vector.load %arg2[%c1, %c0_9, %c0_10] : memref<2x4x256xf32, #tpu.memory_space<vmem>>, vector<1x4x256xf32>
    %33 = vector.shape_cast %32 : vector<1x4x256xf32> to vector<4x256xf32>
    %34 = vector.extract_strided_slice %0 {offsets = [0, 0], sizes = [16, 1], strides = [1, 1]} : vector<16x4xf32> to vector<16x1xf32>
    %35 = vector.extract_strided_slice %33 {offsets = [0, 0], sizes = [1, 256], strides = [1, 1]} : vector<4x256xf32> to vector<1x256xf32>
    %36 = vector.broadcast %34 : vector<16x1xf32> to vector<16x256xf32>
    %37 = vector.broadcast %35 : vector<1x256xf32> to vector<16x256xf32>
    %38 = arith.mulf %36, %37 : vector<16x256xf32>
    %39 = vector.broadcast %1 : vector<16x1xf32> to vector<16x256xf32>
    %40 = arith.addf %38, %39 : vector<16x256xf32>
    %41 = vector.extract_strided_slice %0 {offsets = [0, 1], sizes = [16, 1], strides = [1, 1]} : vector<16x4xf32> to vector<16x1xf32>
    %42 = vector.extract_strided_slice %33 {offsets = [1, 0], sizes = [1, 256], strides = [1, 1]} : vector<4x256xf32> to vector<1x256xf32>
    %43 = vector.broadcast %41 : vector<16x1xf32> to vector<16x256xf32>
    %44 = vector.broadcast %42 : vector<1x256xf32> to vector<16x256xf32>
    %45 = arith.mulf %43, %44 : vector<16x256xf32>
    %46 = arith.addf %40, %45 : vector<16x256xf32>
    %47 = vector.extract_strided_slice %0 {offsets = [0, 2], sizes = [16, 1], strides = [1, 1]} : vector<16x4xf32> to vector<16x1xf32>
    %48 = vector.extract_strided_slice %33 {offsets = [2, 0], sizes = [1, 256], strides = [1, 1]} : vector<4x256xf32> to vector<1x256xf32>
    %49 = vector.broadcast %47 : vector<16x1xf32> to vector<16x256xf32>
    %50 = vector.broadcast %48 : vector<1x256xf32> to vector<16x256xf32>
    %51 = arith.mulf %49, %50 : vector<16x256xf32>
    %52 = arith.addf %46, %51 : vector<16x256xf32>
    %53 = vector.extract_strided_slice %0 {offsets = [0, 3], sizes = [16, 1], strides = [1, 1]} : vector<16x4xf32> to vector<16x1xf32>
    %54 = vector.extract_strided_slice %33 {offsets = [3, 0], sizes = [1, 256], strides = [1, 1]} : vector<4x256xf32> to vector<1x256xf32>
    %55 = vector.broadcast %53 : vector<16x1xf32> to vector<16x256xf32>
    %56 = vector.broadcast %54 : vector<1x256xf32> to vector<16x256xf32>
    %57 = arith.mulf %55, %56 : vector<16x256xf32>
    %58 = arith.addf %52, %57 : vector<16x256xf32>
    %c1_11 = arith.constant 1 : index
    %c0_12 = arith.constant 0 : index
    %c0_13 = arith.constant 0 : index
    %59 = vector.load %arg5[%c1_11, %c0_12, %c0_13] : memref<2x16x256xf32, #tpu.memory_space<vmem>>, vector<1x16x256xf32>
    %60 = vector.shape_cast %59 : vector<1x16x256xf32> to vector<16x256xf32>
    %61 = vector.shape_cast %58 : vector<16x256xf32> to vector<1x16x256xf32>
    tpu.vector_store %arg5[%c1_11, %c0_12, %c0_13], %61 {strides = array<i32>} : memref<2x16x256xf32, #tpu.memory_space<vmem>>, vector<1x16x256xf32>,
    return
  }
  func.func @transform_0(%arg0: i32, %arg1: i32) -> (i32, i32, i32) {
    %c0_i32 = arith.constant 0 : i32
    %c0_i32_0 = arith.constant 0 : i32
    return %arg0, %c0_i32, %arg1 : i32, i32, i32
  }
  func.func @transform_1(%arg0: i32, %arg1: i32) -> (i32, i32) {
    %c0_i32 = arith.constant 0 : i32
    %c0_i32_0 = arith.constant 0 : i32
    %c0_i32_1 = arith.constant 0 : i32
    return %c0_i32, %c0_i32_0 : i32, i32
  }
  func.func @transform_2(%arg0: i32, %arg1: i32) -> (i32, i32) {
    %c0_i32 = arith.constant 0 : i32
    %c0_i32_0 = arith.constant 0 : i32
    %c0_i32_1 = arith.constant 0 : i32
    return %c0_i32, %c0_i32_0 : i32, i32
  }
  func.func @transform_3(%arg0: i32, %arg1: i32) -> (i32, i32, i32) {
    %c0_i32 = arith.constant 0 : i32
    %c0_i32_0 = arith.constant 0 : i32
    return %arg0, %c0_i32, %arg1 : i32, i32, i32
  }
}

</mosaic_0001>

<bundles_post_ra>
// kernel: tpu_custom_call.1
= control target key start
LH: loop header
LB: loop body
LE: loop exit
PB: predicated region body
PF: predicated region fallthrough
CT: control target
= control target key end

     0   :  { %v341_v2 = vmov 0   ;;  %s398_s0 = inlined_call_operand.vmem [shape: f32[2,4,256], index: 0, kind: input, shape index: {}]   ;;  %s399_s1 = inlined_call_operand.vmem [shape: f32[16,4], index: 1, kind: input, shape index: {}]   ;;  %s400_s2 = inlined_call_operand.vmem [shape: f32[16,1], index: 2, kind: input, shape index: {}]   ;;  %s401_s3 = inlined_call_operand.hbm [shape: f32[2,16,256], index: 3, kind: output, shape index: {}]  }
   0x1   :  { %v17_v0 = vld [vmem:[%s400_s2] sm:$0xff]  ;;  %310 = vset.pattern.permute.xlu1 %v341_v2  ;;  %309 = vset.pattern.permute.xlu0 %v341_v2 }
   0x2   :  { %v15_v1 = vld [vmem:[%s399_s1] sm:$0xff]  ;;  %55 = vperm.xlu1 %310, %v17_v0  }
   0x3   :  { %22 = vperm.xlu0 %309, %v15_v1  }
   0x4   :  { %8 = vsyncpa [#allocation3], 0  ;;  %v18_v3 = vld [vmem:[%s400_s2 + $0x8] sm:$0xff]  ;;  %v342_v5 = vmov 1   ;;  %v343_v6 = vmov 2   ;;  %v344_v7 = vmov 3   ;;  %v31_v8 = vlaneseq }
   0x5   :  { %v16_v4 = vld [vmem:[%s399_s1 + $0x8] sm:$0xff]  ;;  %v19_v12 = vld [vmem:[%s398_s0] sm:$0xff] }
   0x6   :  { %60 = vperm.xlu1 %310, %v18_v3   ;;  %v32_v9 = vshrl.u32 %v31_v8, 7  ;;  %v301_v13 = vld [vmem:[%s398_s0 + $0x8] sm:$0xff]  ;;  %s345_s0 = smov [#allocation2]  }
   0x7   :  { %27 = vperm.xlu0 %309, %v16_v4   ;;  %s290_s22 = sshll.u32 %s345_s0, 4  ;;  %s291_s22 = int_to_ptr.vmem [resolvable:$true] %s290_s22 }
   0x8   :  { %v33_v10 = vsub.s32 0, %v32_v9  ;;  %v37_v11 = vsub.s32 4, %v32_v9  ;;  %v77_v14 = vsub.s32 1, %v32_v9  ;;  %v81_v15 = vsub.s32 5, %v32_v9  ;;  %s317_s23 = scalar_lea.vmem %s291_s22, 1024  ;;  %p322_p1 = scmp.lt.s32.totalorder %s291_s22, %s291_s22 }
   0x9   :  { %v111_v22 = vsub.s32 2, %v32_v9  ;;  %v115_v23 = vsub.s32 6, %v32_v9  ;;  %v145_v28 = vsub.s32 3, %v32_v9  ;;  %v149_v29 = vsub.s32 7, %v32_v9  ;;  %p318_p0 = scmp.ne.s32.totalorder %s291_s22, %s317_s23  ;;  %p323_p2 = scmp.lt.s32.totalorder %s317_s23, %s317_s23 }
   0xa   :  { %312 = vset.pattern.permute.xlu1 %v342_v5  ;;  %v34_v17 = vrot.slane %v19_v12, %v33_v10  ;;  %v38_v18 = vrot.slane %v19_v12, %v37_v11  ;;  %v179_v19 = vrot.slane %v301_v13, %v33_v10  ;;  %v183_v20 = vrot.slane %v301_v13, %v37_v11 }
   0xb   :  { %311 = vset.pattern.permute.xlu0 %v342_v5  ;;  %72 = vperm.xlu1 %312, %v16_v4   ;;  %v78_v24 = vrot.slane %v19_v12, %v77_v14  ;;  %v82_v25 = vrot.slane %v19_v12, %v81_v15  ;;  %v205_v26 = vrot.slane %v301_v13, %v77_v14  ;;  %p324_p3 = por %p323_p2, %p322_p1 }
   0xc   :  { %68 = vperm.xlu0 %311, %v15_v1   ;;  %v209_v27 = vrot.slane %v301_v13, %v81_v15  ;;  %v44_v30 = vrot.slane %v34_v17, %v33_v10  ;;  %v48_v31 = vrot.slane %v38_v18, %v33_v10  ;;  %v189_v32 = vrot.slane %v179_v19, %v33_v10 }
   0xd   :  { %v193_v33 = vrot.slane %v183_v20, %v33_v10  ;;  %v112_v36 = vrot.slane %v19_v12, %v111_v22  ;;  %v116_v37 = vrot.slane %v19_v12, %v115_v23  ;;  %v231_v38 = vrot.slane %v301_v13, %v111_v22  ;;  %p325_p4 = pnand %p324_p3, %p318_p0 }
   0xe   :  { %v235_v39 = vrot.slane %v301_v13, %v115_v23  ;;  %v88_v40 = vrot.slane %v78_v24, %v77_v14  ;;  %v92_v41 = vrot.slane %v82_v25, %v77_v14  ;;  %v215_v42 = vrot.slane %v205_v26, %v77_v14 }
   0xf   :  { %313 = vset.pattern.permute.xlu1 %v343_v6  ;;  %v219_v43 = vrot.slane %v209_v27, %v77_v14  ;;  %v146_v44 = vrot.slane %v19_v12, %v145_v28  ;;  %v150_v45 = vrot.slane %v19_v12, %v149_v29  ;;  %v257_v46 = vrot.slane %v301_v13, %v145_v28 }
  0x10   :  { %314 = vset.pattern.permute.xlu0 %v343_v6  ;;  %102 = vperm.xlu1 %313, %v15_v1   ;;  %v261_v47 = vrot.slane %v301_v13, %v149_v29  ;;  %v122_v54 = vrot.slane %v112_v36, %v111_v22  ;;  %v126_v55 = vrot.slane %v116_v37, %v111_v22 }
  0x11   :  { %106 = vperm.xlu0 %314, %v16_v4   ;;  %v241_v56 = vrot.slane %v231_v38, %v111_v22  ;;  %v245_v57 = vrot.slane %v235_v39, %v111_v22  ;;  %v156_v62 = vrot.slane %v146_v44, %v145_v28  ;;  %v160_v63 = vrot.slane %v150_v45, %v145_v28 }
  0x12   :  { %v267_v0 = vrot.slane %v257_v46, %v145_v28 }
  0x14   :  { %315 = vset.pattern.permute.xlu1 %v344_v7 }
  0x15   :  { %136 = vperm.xlu1 %315, %v15_v1   ;;  %316 = vset.pattern.permute.xlu0 %v344_v7  ;;  %v271_v1 = vrot.slane %v261_v47, %v145_v28 }
  0x19   :  { %140 = vperm.xlu1 %315, %v16_v4  }
  0x81   :  { %v56_v16 = vpop.permute.xlu1 %55 }
  0x82   :  { %v23_v21 = vpop.permute.xlu0 %22 }
  0x83   :  { %v49_v48 = vmul.f32 %v44_v30, %v23_v21  ;;  %v50_v49 = vmul.f32 %v48_v31, %v23_v21  ;;  %v194_v50 = vmul.f32 %v189_v32, %v23_v21  ;;  %v195_v51 = vmul.f32 %v193_v33, %v23_v21 }
  0x85   :  { %v61_v34 = vpop.permute.xlu1 %60  ;;  %v63_v2 = vadd.f32 %v56_v16, %v49_v48  ;;  %v64_v3 = vadd.f32 %v56_v16, %v50_v49  ;;  %v198_v4 = vadd.f32 %v194_v50, %v56_v16  ;;  %v199_v5 = vadd.f32 %v195_v51, %v56_v16 }
  0x86   :  { %v28_v35 = vpop.permute.xlu0 %27 }
  0x87   :  { %v51_v58 = vmul.f32 %v44_v30, %v28_v35  ;;  %v52_v59 = vmul.f32 %v48_v31, %v28_v35  ;;  %v196_v60 = vmul.f32 %v189_v32, %v28_v35  ;;  %v197_v61 = vmul.f32 %v193_v33, %v28_v35 }
  0x89   :  { %v65_v10 = vadd.f32 %v61_v34, %v51_v58  ;;  %v66_v11 = vadd.f32 %v61_v34, %v52_v59  ;;  %v200_v12 = vadd.f32 %v196_v60, %v61_v34  ;;  %v201_v13 = vadd.f32 %v197_v61, %v61_v34 }
  0x8a   :  { %v73_v52 = vpop.permute.xlu1 %72 }
  0x8b   :  { %v69_v53 = vpop.permute.xlu0 %68  ;;  %v95_v21 = vmul.f32 %v88_v40, %v73_v52  ;;  %v96_v22 = vmul.f32 %v92_v41, %v73_v52  ;;  %v222_v23 = vmul.f32 %v215_v42, %v73_v52  ;;  %v223_v24 = vmul.f32 %v219_v43, %v73_v52 }
  0x8c   :  { %v93_v6 = vmul.f32 %v88_v40, %v69_v53  ;;  %v94_v7 = vmul.f32 %v92_v41, %v69_v53  ;;  %v220_v8 = vmul.f32 %v215_v42, %v69_v53  ;;  %v221_v9 = vmul.f32 %v219_v43, %v69_v53 }
  0x8d   :  { %v99_v41 = vadd.f32 %v95_v21, %v65_v10  ;;  %v100_v42 = vadd.f32 %v96_v22, %v66_v11  ;;  %v226_v43 = vadd.f32 %v222_v23, %v200_v12  ;;  %v227_v44 = vadd.f32 %v223_v24, %v201_v13 }
  0x8e   :  { %v97_v25 = vadd.f32 %v93_v6, %v63_v2  ;;  %v98_v16 = vadd.f32 %v94_v7, %v64_v3  ;;  %v224_v26 = vadd.f32 %v220_v8, %v198_v4  ;;  %v225_v27 = vadd.f32 %v221_v9, %v199_v5 }
  0x8f   :  { %v103_v14 = vpop.permute.xlu1 %102 }
  0x90   :  { %v127_v15 = vmul.f32 %v122_v54, %v103_v14  ;;  %v128_v17 = vmul.f32 %v126_v55, %v103_v14  ;;  %v246_v18 = vmul.f32 %v241_v56, %v103_v14  ;;  %v247_v19 = vmul.f32 %v245_v57, %v103_v14  ;;  %v107_v20 = vpop.permute.xlu0 %106 }
  0x91   :  { %v129_v28 = vmul.f32 %v122_v54, %v107_v20  ;;  %v130_v29 = vmul.f32 %v126_v55, %v107_v20  ;;  %v248_v30 = vmul.f32 %v241_v56, %v107_v20  ;;  %v249_v31 = vmul.f32 %v245_v57, %v107_v20 }
  0x92   :  { %v131_v32 = vadd.f32 %v127_v15, %v97_v25  ;;  %v132_v33 = vadd.f32 %v128_v17, %v98_v16  ;;  %v250_v34 = vadd.f32 %v246_v18, %v224_v26  ;;  %v251_v35 = vadd.f32 %v247_v19, %v225_v27 }
  0x93   :  { %v133_v49 = vadd.f32 %v129_v28, %v99_v41  ;;  %v134_v50 = vadd.f32 %v130_v29, %v100_v42  ;;  %v252_v51 = vadd.f32 %v248_v30, %v226_v43  ;;  %v253_v52 = vadd.f32 %v249_v31, %v227_v44 }
  0x94   :  { %v137_v36 = vpop.permute.xlu1 %136 }
  0x95   :  { %v161_v37 = vmul.f32 %v156_v62, %v137_v36  ;;  %v162_v38 = vmul.f32 %v160_v63, %v137_v36  ;;  %v272_v39 = vmul.f32 %v267_v0, %v137_v36  ;;  %v273_v40 = vmul.f32 %v271_v1, %v137_v36 }
  0x97   :  { %v165_v45 = vadd.f32 %v161_v37, %v131_v32  ;;  %v166_v46 = vadd.f32 %v162_v38, %v132_v33  ;;  %v276_v47 = vadd.f32 %v272_v39, %v250_v34  ;;  %v277_v48 = vadd.f32 %v273_v40, %v251_v35 }
  0x98   :  { %v141_v53 = vpop.permute.xlu1 %140 }
  0x99   :  { %v163_v54 = vmul.f32 %v156_v62, %v141_v53  ;;  %v164_v55 = vmul.f32 %v160_v63, %v141_v53  ;;  %169 = vst [vmem:[#allocation2] sm:$0xff] %v165_v45  ;;  %170 = vst [vmem:[#allocation2 + $0x8] sm:$0xff] %v166_v46  ;;  %v274_v56 = vmul.f32 %v267_v0, %v141_v53 }
  0x9a   :  { %v275_v57 = vmul.f32 %v271_v1, %v141_v53  ;;  %281 = vst [vmem:[#allocation2 + $0x20] sm:$0xff] %v276_v47  ;;  %282 = vst [vmem:[#allocation2 + $0x28] sm:$0xff] %v277_v48 }
  0x9b   :  { %v167_v58 = vadd.f32 %v163_v54, %v133_v49  ;;  %v168_v59 = vadd.f32 %v164_v55, %v134_v50  ;;  %v278_v60 = vadd.f32 %v274_v56, %v252_v51 }
  0x9c   :  { %v279_v61 = vadd.f32 %v275_v57, %v253_v52 }
  0x9d   :  { %171 = vst [vmem:[#allocation2 + $0x10] sm:$0xff] %v167_v58  ;;  %172 = vst [vmem:[#allocation2 + $0x18] sm:$0xff] %v168_v59 }
  0x9e   :  { %283 = vst [vmem:[#allocation2 + $0x30] sm:$0xff] %v278_v60  ;;  %284 = vst [vmem:[#allocation2 + $0x38] sm:$0xff] %v279_v61 }
  0x9f   :  { %328 = shalt.err (!%p325_p4)
}
  0xa0   :  { %s329_s26 = scalar_lea.hbm %s401_s3, 1024 }
  0xa1   :  { %p330_p5 = scmp.ne.s32.totalorder %s401_s3, %s329_s26  ;;  %p333_p6 = scmp.lt.u32.totalorder %s329_s26, %s401_s3 }
  0xa3   :  { %p335_p7 = pnand %p333_p6, %p330_p5 }
  0xa5   :  { %338 = shalt.err (!%p335_p7)
}
  0xa6   :  { %s346_s4 = smov 256   ;;  %s347_s5 = smov 16  }
  0xa7   :  { %296 = dma.vmem_to_hbm [thread:$0]  %s291_s22, 1024, %s401_s3, [#allocation3], %s346_s4, %s346_s4, %s347_s5  }
  0xa8   :  { %339 = dma.done.wait [#allocation3], 1024  }
  0xa9   :  { %340 = vsyncadd [#allocation3], 4294966272 }
  0xaa   :  { %300 = vsyncpa [#allocation3], 1 }

</bundles_post_ra>
